<compile_context>
chip_gen: v7x
topology: tpu7x:2x2x1
jax: 0.10.0
libtpu: 0.0.40
codegen_flags: <defaults>
</compile_context>

<pallas_src>
import functools

import jax
import jax.numpy as jnp
from jax import lax
from jax.experimental import pallas as pl
from jax.experimental.pallas import tpu as pltpu

_LANE = 128
_SUBLANE = 8
_TARGET_TILE_BYTES = 2 * 1024 * 1024   # ~2 MiB per input tile (review: 2-4 MiB on v7x)
_SUB_ROWS = 512                        # in-kernel accumulation sub-chunk (256 KiB f32)
_SMALL_FALLBACK_BYTES = 512 * 1024     # below this, a fused XLA reduction is faster


def _num_tensorcores():
    """Best-effort TensorCores-per-chip: 2 on v7x, 1 on v5e/v6e."""
    try:
        info = pltpu.get_tpu_info()
        for name in ("num_cores", "core_count", "num_tensorcores",
                     "tensorcore_count", "cores_per_chip"):
            v = getattr(info, name, None)
            if isinstance(v, int) and 1 <= v <= 8:
                return v
    except Exception:
        pass
    try:
        kind = jax.devices()[0].device_kind.lower()
        if "7" in kind:       # e.g. "tpu7x": 2 TensorCores per chip
            return 2
    except Exception:
        pass
    return 1


def _pick_sub_rows(block_rows, row_align, target):
    """Largest divisor of block_rows that is <= target and a multiple of row_align."""
    best = row_align
    s = row_align
    limit = min(target, block_rows)
    while s <= limit:
        if block_rows % s == 0:
            best = s
        s += row_align
    return best


def _recon_loss_kernel(sr_ref, hr_ref, out_ref, *, squared, block_rows, sub_rows,
                       inner_blocks, valid_rows):
    """Accumulate sums of |d| (or d^2) into a resident (1, 8, 128) output block."""
    p = pl.program_id(0)   # partial-sum axis (one per TensorCore on v7x)
    i = pl.program_id(1)   # sequential reduction axis

    @pl.when(i == 0)
    def _init():
        out_ref[...] = jnp.zeros_like(out_ref)

    # Virtual (unclamped) block id; blocks past the end were clamped onto the
    # last real block by the index_map and are fully masked out below.
    # int32 arithmetic: safe below ~2^31 rows (~2.7e11 elements) per chip.
    vb = p * inner_blocks + i
    block_start = vb * block_rows
    n_sub = block_rows // sub_rows

    def _contrib(r0):
        d = (sr_ref[pl.ds(r0, sub_rows), :].astype(jnp.float32)
             - hr_ref[pl.ds(r0, sub_rows), :].astype(jnp.float32))
        return d * d if squared else jnp.abs(d)

    def _body_fast(j, acc):
        c = _contrib(j * sub_rows)
        return acc + c.reshape(-1, _SUBLANE, _LANE).sum(axis=0)

    def _body_masked(j, acc):
        r0 = j * sub_rows
        c = _contrib(r0)
        row = lax.broadcasted_iota(jnp.int32, c.shape, 0)
        keep = (block_start + r0 + row) < valid_rows
        c = jnp.where(keep, c, 0.0)
        return acc + c.reshape(-1, _SUBLANE, _LANE).sum(axis=0)

    zero = jnp.zeros((_SUBLANE, _LANE), jnp.float32)
    fully_valid = (block_start + block_rows) <= valid_rows

    @pl.when(fully_valid)
    def _fast():
        out_ref[...] += lax.fori_loop(0, n_sub, _body_fast, zero, unroll=True)[None]

    @pl.when(jnp.logical_not(fully_valid))
    def _tail():
        out_ref[...] += lax.fori_loop(0, n_sub, _body_masked, zero, unroll=True)[None]


@functools.partial(
    jax.jit,
    static_argnames=("loss_type", "target_tile_bytes", "small_fallback_bytes"))
def reconstruction_loss(sr, hr, loss_type="l1", *,
                        target_tile_bytes=_TARGET_TILE_BYTES,
                        small_fallback_bytes=_SMALL_FALLBACK_BYTES):
    """Pallas equivalent of ReconstructionLoss(type=loss_type)(sr, hr)."""
    if loss_type == "l1":
        squared = False
    elif loss_type == "l2":
        squared = True
    else:
        raise SystemExit("Error: no such type of ReconstructionLoss!")

    assert sr.shape == hr.shape, "sr and hr must have identical shapes"
    assert sr.dtype == hr.dtype, "sr and hr must have identical dtypes"

    n_elems = sr.size
    itemsize = jnp.dtype(sr.dtype).itemsize
    row_align = max(_SUBLANE, 32 // itemsize)   # native sublane tiling for this dtype
    rows = n_elems // _LANE                     # full 128-wide rows of real data
    n_main = rows * _LANE

    # Small-input fallback: pallas_call launch + pipeline overhead dominates for
    # tiny tensors; a fused XLA reduction is strictly faster there.
    if n_elems * itemsize < small_fallback_bytes or rows < row_align:
        d = sr.astype(jnp.float32) - hr.astype(jnp.float32)
        return jnp.mean(d * d) if squared else jnp.mean(jnp.abs(d))

    sr_flat = jnp.ravel(sr)
    hr_flat = jnp.ravel(hr)

    # Ragged (<128-element) tail: tiny jnp reduction in the wrapper, so the
    # kernel never consumes a padded buffer.  Zero tail contributes nothing.
    tail = n_elems - n_main
    if tail:
        dt = (sr_flat[n_main:].astype(jnp.float32)
              - hr_flat[n_main:].astype(jnp.float32))
        tail_sum = jnp.sum(dt * dt) if squared else jnp.sum(jnp.abs(dt))
        # TODO(synk): the main-part slice below may still materialize a copy for
        # ragged sizes; a manual-DMA (memory_space=pl.ANY) path over the original
        # buffers would make the ragged case fully zero-copy.
        sr_flat = sr_flat[:n_main]
        hr_flat = hr_flat[:n_main]
    else:
        tail_sum = jnp.float32(0.0)

    # Free reshape to a lane-dense (rows, 128) slab.
    sr2d = sr_flat.reshape(rows, _LANE)
    hr2d = hr_flat.reshape(rows, _LANE)

    # Tile geometry: ~2 MiB per input tile, multiple of the sublane alignment,
    # never larger than the slab.  Partial / clamped blocks are masked in-kernel.
    target_rows = max(row_align,
                      (target_tile_bytes // (itemsize * _LANE)) // row_align * row_align)
    block_rows = min(target_rows, (rows // row_align) * row_align)
    sub_rows = _pick_sub_rows(block_rows, row_align, _SUB_ROWS)

    total_blocks = pl.cdiv(rows, block_rows)
    num_cores = _num_tensorcores()
    num_parts = max(1, min(num_cores, total_blocks))   # 1 on v5e/v6e, 2 on v7x
    inner_blocks = pl.cdiv(total_blocks, num_parts)
    last_block = total_blocks - 1

    def in_index_map(p, i):
        # Clamp virtual block ids past the end onto the last real block; the
        # kernel's row mask zeroes their contribution.
        return (jnp.minimum(p * inner_blocks + i, last_block), 0)

    kernel = functools.partial(
        _recon_loss_kernel, squared=squared, block_rows=block_rows,
        sub_rows=sub_rows, inner_blocks=inner_blocks, valid_rows=rows)

    first_sem = pltpu.CORE_PARALLEL if num_parts > 1 else pltpu.ARBITRARY

    partials = pl.pallas_call(
        kernel,
        out_shape=jax.ShapeDtypeStruct((num_parts, _SUBLANE, _LANE), jnp.float32),
        grid_spec=pltpu.PrefetchScalarGridSpec(
            num_scalar_prefetch=0,
            grid=(num_parts, inner_blocks),
            in_specs=[
                # NOTE: pipeline_mode=pl.Buffered(3) is a possible further sweep
                # (+1 tile/input of VMEM) if profiles show exposed DMA at steps.
                pl.BlockSpec((block_rows, _LANE), in_index_map),
                pl.BlockSpec((block_rows, _LANE), in_index_map),
            ],
            out_specs=pl.BlockSpec((1, _SUBLANE, _LANE), lambda p, i: (p, 0, 0)),
        ),
        compiler_params=pltpu.CompilerParams(
            dimension_semantics=(first_sem, pltpu.ARBITRARY),
            vmem_limit_bytes=32 * 1024 * 1024,
        ),
        cost_estimate=pl.CostEstimate(flops=3 * n_main, transcendentals=0,
                                      bytes_accessed=2 * n_main * itemsize),
    )(sr2d, hr2d)

    # Tiny final cross-partial / cross-lane reduction + mean over ORIGINAL count.
    return (jnp.sum(partials) + tail_sum) * jnp.float32(1.0 / n_elems)


if __name__ == "__main__":
    key = jax.random.PRNGKey(0)
    k1, k2, k3, k4, k5, k6 = jax.random.split(key, 6)

    # Small NCHW inputs, like the PyTorch module's typical super-resolution usage.
    sr = jax.random.normal(k1, (2, 4, 16, 16), dtype=jnp.float32)
    hr = jax.random.normal(k2, (2, 4, 16, 16), dtype=jnp.float32)
    ref_l1 = jnp.mean(jnp.abs(sr - hr))
    ref_l2 = jnp.mean((sr - hr) ** 2)

    # Force the Pallas path (the wrapper routes tiny inputs to XLA by default).
    loss_l1 = jax.block_until_ready(
        reconstruction_loss(sr, hr, loss_type="l1", small_fallback_bytes=0))
    loss_l2 = jax.block_until_ready(
        reconstruction_loss(sr, hr, loss_type="l2", small_fallback_bytes=0))
    assert jnp.allclose(loss_l1, ref_l1, rtol=1e-5, atol=1e-6), (loss_l1, ref_l1)
    assert jnp.allclose(loss_l2, ref_l2, rtol=1e-5, atol=1e-6), (loss_l2, ref_l2)

    # Default small-input XLA fallback must agree as well.
    loss_fb = jax.block_until_ready(reconstruction_loss(sr, hr, loss_type="l1"))
    assert jnp.allclose(loss_fb, ref_l1, rtol=1e-5, atol=1e-6), (loss_fb, ref_l1)

    # bf16 inputs stay bf16 through the DMA; f32 cast/accumulation in-kernel.
    sr_bf, hr_bf = sr.astype(jnp.bfloat16), hr.astype(jnp.bfloat16)
    l1_bf = jax.block_until_ready(
        reconstruction_loss(sr_bf, hr_bf, loss_type="l1", small_fallback_bytes=0))
    ref_l1_bf = jnp.mean(jnp.abs(sr_bf.astype(jnp.float32) - hr_bf.astype(jnp.float32)))
    assert jnp.allclose(l1_bf, ref_l1_bf, rtol=1e-5, atol=1e-6), (l1_bf, ref_l1_bf)

    # Ragged element count (n % 128 != 0): <128-element tail in the wrapper,
    # partial last row-block masked in-kernel.
    sr_r = jax.random.normal(k3, (1, 3, 37, 40), dtype=jnp.float32)
    hr_r = jax.random.normal(k4, (1, 3, 37, 40), dtype=jnp.float32)
    l2_r = jax.block_until_ready(
        reconstruction_loss(sr_r, hr_r, loss_type="l2", small_fallback_bytes=0))
    ref_l2_r = jnp.mean((sr_r - hr_r) ** 2)
    assert jnp.allclose(l2_r, ref_l2_r, rtol=1e-5, atol=1e-6), (l2_r, ref_l2_r)

    # Multi-block grid with a partial edge block (forced small tile): exercises
    # the reduction axis, the in-kernel row mask and the sub-chunk fori_loop.
    sr_g = jax.random.normal(k5, (2, 4, 96, 128), dtype=jnp.float32)
    hr_g = jax.random.normal(k6, (2, 4, 96, 128), dtype=jnp.float32)
    l1_g = jax.block_until_ready(
        reconstruction_loss(sr_g, hr_g, loss_type="l1", small_fallback_bytes=0,
                            target_tile_bytes=512 * _LANE * 4))
    ref_l1_g = jnp.mean(jnp.abs(sr_g - hr_g))
    assert jnp.allclose(l1_g, ref_l1_g, rtol=1e-5, atol=1e-6), (l1_g, ref_l1_g)

    print("KERNEL_OK")
</pallas_src>

<mosaic_0001>
module attributes {stable_mosaic.version = 11 : i64} {
  func.func @_recon_loss_kernel(%arg0: i32, %arg1: i32, %arg2: memref<16x128xf32, #tpu.memory_space<vmem>>, %arg3: memref<16x128xf32, #tpu.memory_space<vmem>>, %arg4: memref<1x8x128xf32, #tpu.memory_space<vmem>>) attributes {dimension_semantics = [#tpu.dimension_semantics<arbitrary>, #tpu.dimension_semantics<arbitrary>], iteration_bounds = array<i64: 1, 1>, scalar_prefetch = 0 : i64, scratch_operands = 0 : i64, tpu.core_type = #tpu.core_type<tc>, window_params = [{transform_indices = @transform_0, window_bounds = array<i64: 16, 128>}, {transform_indices = @transform_1, window_bounds = array<i64: 16, 128>}, {transform_indices = @transform_2, window_bounds = array<i64: 1, 8, 128>}]} {
    %c0_i32 = arith.constant 0 : i32
    %0 = arith.cmpi eq, %arg1, %c0_i32 : i32
    %1 = arith.extui %0 : i1 to i32
    %c0_i32_0 = arith.constant 0 : i32
    %2 = arith.cmpi ne, %1, %c0_i32_0 : i32
    scf.if %2 {
      %cst_5 = arith.constant 0.000000e+00 : f32
      %14 = vector.broadcast %cst_5 : f32 to vector<1x8x128xf32>
      %c0 = arith.constant 0 : index
      %c0_6 = arith.constant 0 : index
      %c0_7 = arith.constant 0 : index
      %15 = vector.load %arg4[%c0, %c0_6, %c0_7] : memref<1x8x128xf32, #tpu.memory_space<vmem>>, vector<1x8x128xf32>
      tpu.vector_store %arg4[%c0, %c0_6, %c0_7], %14 {strides = array<i32>} : memref<1x8x128xf32, #tpu.memory_space<vmem>>, vector<1x8x128xf32>,
    } else {
    }
    %c1_i32 = arith.constant 1 : i32
    %3 = arith.muli %arg0, %c1_i32 : i32
    %4 = arith.addi %3, %arg1 : i32
    %c16_i32 = arith.constant 16 : i32
    %5 = arith.muli %4, %c16_i32 : i32
    %cst = arith.constant 0.000000e+00 : f32
    %6 = vector.broadcast %cst : f32 to vector<8x128xf32>
    %c16_i32_1 = arith.constant 16 : i32
    %7 = arith.addi %5, %c16_i32_1 : i32
    %c16_i32_2 = arith.constant 16 : i32
    %8 = arith.cmpi sle, %7, %c16_i32_2 : i32
    %9 = arith.extui %8 : i1 to i32
    %c0_i32_3 = arith.constant 0 : i32
    %10 = arith.cmpi ne, %9, %c0_i32_3 : i32
    scf.if %10 {
      %c0 = arith.constant 0 : index
      %c0_5 = arith.constant 0 : index
      %c0_6 = arith.constant 0 : index
      %14 = vector.load %arg4[%c0, %c0_5, %c0_6] : memref<1x8x128xf32, #tpu.memory_space<vmem>>, vector<1x8x128xf32>
      %c0_i32_7 = arith.constant 0 : i32
      %c16_i32_8 = arith.constant 16 : i32
      %15 = arith.muli %c0_i32_7, %c16_i32_8 : i32
      %16 = arith.index_cast %15 : i32 to index
      %c0_9 = arith.constant 0 : index
      %17 = vector.load %arg2[%16, %c0_9] : memref<16x128xf32, #tpu.memory_space<vmem>>, vector<16x128xf32>
      %18 = arith.index_cast %15 : i32 to index
      %c0_10 = arith.constant 0 : index
      %19 = vector.load %arg3[%18, %c0_10] : memref<16x128xf32, #tpu.memory_space<vmem>>, vector<16x128xf32>
      %20 = arith.subf %17, %19 : vector<16x128xf32>
      %21 = math.absf %20 : vector<16x128xf32>
      %22 = vector.shape_cast %21 : vector<16x128xf32> to vector<2x8x128xf32>
      %cst_11 = arith.constant dense<0.000000e+00> : vector<8x128xf32>
      %23 = vector.multi_reduction <add>, %22, %cst_11 [0] : vector<2x8x128xf32> to vector<8x128xf32>
      %24 = arith.addf %6, %23 : vector<8x128xf32>
      %c1_i32_12 = arith.constant 1 : i32
      %25 = vector.shape_cast %24 : vector<8x128xf32> to vector<1x8x128xf32>
      %26 = arith.addf %14, %25 : vector<1x8x128xf32>
      %c0_13 = arith.constant 0 : index
      %c0_14 = arith.constant 0 : index
      %c0_15 = arith.constant 0 : index
      %27 = vector.load %arg4[%c0_13, %c0_14, %c0_15] : memref<1x8x128xf32, #tpu.memory_space<vmem>>, vector<1x8x128xf32>
      tpu.vector_store %arg4[%c0_13, %c0_14, %c0_15], %26 {strides = array<i32>} : memref<1x8x128xf32, #tpu.memory_space<vmem>>, vector<1x8x128xf32>,
    } else {
    }
    %true = arith.constant true
    %11 = arith.xori %8, %true : i1
    %12 = arith.extui %11 : i1 to i32
    %c0_i32_4 = arith.constant 0 : i32
    %13 = arith.cmpi ne, %12, %c0_i32_4 : i32
    scf.if %13 {
      %c0 = arith.constant 0 : index
      %c0_5 = arith.constant 0 : index
      %c0_6 = arith.constant 0 : index
      %14 = vector.load %arg4[%c0, %c0_5, %c0_6] : memref<1x8x128xf32, #tpu.memory_space<vmem>>, vector<1x8x128xf32>
      %c0_i32_7 = arith.constant 0 : i32
      %c16_i32_8 = arith.constant 16 : i32
      %15 = arith.muli %c0_i32_7, %c16_i32_8 : i32
      %16 = arith.index_cast %15 : i32 to index
      %c0_9 = arith.constant 0 : index
      %17 = vector.load %arg2[%16, %c0_9] : memref<16x128xf32, #tpu.memory_space<vmem>>, vector<16x128xf32>
      %18 = arith.index_cast %15 : i32 to index
      %c0_10 = arith.constant 0 : index
      %19 = vector.load %arg3[%18, %c0_10] : memref<16x128xf32, #tpu.memory_space<vmem>>, vector<16x128xf32>
      %20 = arith.subf %17, %19 : vector<16x128xf32>
      %21 = math.absf %20 : vector<16x128xf32>
      %22 = tpu.iota {dimensions = array<i32: 0>} : vector<16x128xi32>
      %23 = arith.addi %5, %15 : i32
      %24 = vector.broadcast %23 : i32 to vector<16x128xi32>
      %25 = arith.addi %24, %22 : vector<16x128xi32>
      %c16_i32_11 = arith.constant 16 : i32
      %26 = vector.broadcast %c16_i32_11 : i32 to vector<16x128xi32>
      %27 = arith.cmpi slt, %25, %26 : vector<16x128xi32>
      %cst_12 = arith.constant 0.000000e+00 : f32
      %28 = vector.broadcast %cst_12 : f32 to vector<16x128xf32>
      %29 = arith.select %27, %21, %28 : vector<16x128xi1>, vector<16x128xf32>
      %30 = vector.shape_cast %29 : vector<16x128xf32> to vector<2x8x128xf32>
      %cst_13 = arith.constant dense<0.000000e+00> : vector<8x128xf32>
      %31 = vector.multi_reduction <add>, %30, %cst_13 [0] : vector<2x8x128xf32> to vector<8x128xf32>
      %32 = arith.addf %6, %31 : vector<8x128xf32>
      %c1_i32_14 = arith.constant 1 : i32
      %33 = vector.shape_cast %32 : vector<8x128xf32> to vector<1x8x128xf32>
      %34 = arith.addf %14, %33 : vector<1x8x128xf32>
      %c0_15 = arith.constant 0 : index
      %c0_16 = arith.constant 0 : index
      %c0_17 = arith.constant 0 : index
      %35 = vector.load %arg4[%c0_15, %c0_16, %c0_17] : memref<1x8x128xf32, #tpu.memory_space<vmem>>, vector<1x8x128xf32>
      tpu.vector_store %arg4[%c0_15, %c0_16, %c0_17], %34 {strides = array<i32>} : memref<1x8x128xf32, #tpu.memory_space<vmem>>, vector<1x8x128xf32>,
    } else {
    }
    return
  }
  func.func @transform_0(%arg0: i32, %arg1: i32) -> (i32, i32) {
    %c1_i32 = arith.constant 1 : i32
    %0 = arith.muli %arg0, %c1_i32 : i32
    %1 = arith.addi %0, %arg1 : i32
    %c0_i32 = arith.constant 0 : i32
    %2 = arith.minsi %1, %c0_i32 : i32
    %c0_i32_0 = arith.constant 0 : i32
    %c0_i32_1 = arith.constant 0 : i32
    return %2, %c0_i32_0 : i32, i32
  }
  func.func @transform_1(%arg0: i32, %arg1: i32) -> (i32, i32) {
    %c1_i32 = arith.constant 1 : i32
    %0 = arith.muli %arg0, %c1_i32 : i32
    %1 = arith.addi %0, %arg1 : i32
    %c0_i32 = arith.constant 0 : i32
    %2 = arith.minsi %1, %c0_i32 : i32
    %c0_i32_0 = arith.constant 0 : i32
    %c0_i32_1 = arith.constant 0 : i32
    return %2, %c0_i32_0 : i32, i32
  }
  func.func @transform_2(%arg0: i32, %arg1: i32) -> (i32, i32, i32) {
    %c0_i32 = arith.constant 0 : i32
    %c0_i32_0 = arith.constant 0 : i32
    %c0_i32_1 = arith.constant 0 : i32
    return %arg0, %c0_i32, %c0_i32_0 : i32, i32, i32
  }
}

</mosaic_0001>

<bundles_post_ra>
// kernel: reconstruction_loss.1
= control target key start
LH: loop header
LB: loop body
LE: loop exit
PB: predicated region body
PF: predicated region fallthrough
CT: control target
= control target key end

     0   :  { %s174_s0 = inlined_call_operand.vmem [shape: f32[16,128], index: 0, kind: input, shape index: {}]   ;;  %s175_s1 = inlined_call_operand.vmem [shape: f32[16,128], index: 1, kind: input, shape index: {}]   ;;  %s176_s2 = inlined_call_operand.vmem [shape: f32[1,8,128], index: 2, kind: output, shape index: {}]  }
   0x1   :  { %v88_v0 = vld [vmem:[%s174_s0] sm:$0xff]  ;;  %v89_v1 = vld [vmem:[%s174_s0 + $0x8] sm:$0xff] }
   0x2   :  { %v90_v2 = vld [vmem:[%s175_s1] sm:$0xff]  ;;  %v91_v3 = vld [vmem:[%s175_s1 + $0x8] sm:$0xff] }
   0x3   :  { %v92_v4 = vsub.f32 %v88_v0, %v90_v2  ;;  %v93_v5 = vsub.f32 %v89_v1, %v91_v3 }
   0x5   :  { %v94_v6 = vand.u32 2147483647, %v92_v4  ;;  %v95_v7 = vand.u32 2147483647, %v93_v5 }
   0x7   :  { %v96_v8 = vadd.f32 %v95_v7, %v94_v6 }
   0x9   :  { %99 = vst [vmem:[%s176_s2] sm:$0xff] %v96_v8 }

</bundles_post_ra>
